<compile_context>
chip_gen: v6e
topology: v6e:2x2x1
jax: 0.10.0
libtpu: 0.0.40
codegen_flags: <defaults>
</compile_context>

<pallas_src>
import functools

import numpy as np
import jax
import jax.numpy as jnp
from jax.experimental import pallas as pl
from jax.experimental.pallas import tpu as pltpu

EPS = 1e-5


# --------------------------------------------------------------------------
# Pass 1: conv1 (3x3, pad=1) + bias + ReLU, merged BN partial statistics.
# --------------------------------------------------------------------------
def _conv1_stats_kernel(x_ref, w1_ref, b1_ref, mask_ref,
                        y_ref, stats_ref, xw_ref, *, taps, padl):
    # x_ref    : (B, Cin, M)        f32  input block, M = H*W on lanes
    # w1_ref   : (Cout, 9*Cin)      mdt  tap-major channel-major weights
    # b1_ref   : (Cout, 1)          f32
    # mask_ref : (9, M)             mdt  per-tap in-image validity mask
    # y_ref    : (B, Cout, M)       mdt  conv1+ReLU output (unnormalized)
    # stats_ref: (1, Cout, 2)       f32  [channel sum, channel sum-of-squares]
    # xw_ref   : (Cin, 2*padl + M)  mdt  zero-margined shift scratch
    B, Cin, M = x_ref.shape
    Cout = w1_ref.shape[0]
    mdt = xw_ref.dtype
    wide = xw_ref.shape[1]

    # Zero only the shift margins once per grid step (interior is fully
    # overwritten per image; no cross-step scratch state => megacore-safe).
    xw_ref[:, :padl] = jnp.zeros((Cin, padl), mdt)
    xw_ref[:, padl + M:] = jnp.zeros((Cin, wide - padl - M), mdt)

    s = jnp.zeros((Cout, 1), jnp.float32)
    ss = jnp.zeros((Cout, 1), jnp.float32)
    for b in range(B):
        xw_ref[:, padl:padl + M] = x_ref[b].astype(mdt)
        acc = jnp.zeros((Cout, M), jnp.float32)
        for k, off in enumerate(taps):
            # shifted (Cin, M) view of the flat image, invalid lanes masked
            tap = xw_ref[:, padl + off:padl + off + M] * mask_ref[k:k + 1, :]
            acc = acc + jnp.dot(w1_ref[:, k * Cin:(k + 1) * Cin], tap,
                                preferred_element_type=jnp.float32)
        acc = jnp.maximum(acc + b1_ref[...], 0.0)            # bias + ReLU
        y_ref[b] = acc.astype(y_ref.dtype)                   # lane-dense store
        s = s + jnp.sum(acc, axis=1, keepdims=True)
        ss = ss + jnp.sum(acc * acc, axis=1, keepdims=True)
    stats_ref[0] = jnp.concatenate([s, ss], axis=1)          # (Cout, 2)


# --------------------------------------------------------------------------
# Pass 2: folded BatchNorm + conv2 (3x3, pad=1) + bias + ReLU.
# --------------------------------------------------------------------------
def _bn_conv2_kernel(y_ref, scale_ref, shift_ref, w2_ref, b2_ref, mask_ref,
                     o_ref, yw_ref, *, taps, padl):
    # y_ref    : (B, Cout, M)        mdt  unnormalized conv1+ReLU output
    # scale_ref: (Cout, 1)           f32  gamma * rsqrt(var + eps)
    # shift_ref: (Cout, 1)           f32  beta - mean * scale
    # w2_ref   : (Cout, 9*Cout)      mdt  tap-major channel-major weights
    # b2_ref   : (Cout, 1)           f32
    # mask_ref : (9, M)              mdt
    # o_ref    : (B, Cout, M)        f32  final output (NCHW-flat)
    # yw_ref   : (Cout, 2*padl + M)  mdt  zero-margined shift scratch
    B, Cout, M = o_ref.shape
    mdt = yw_ref.dtype
    wide = yw_ref.shape[1]

    yw_ref[:, :padl] = jnp.zeros((Cout, padl), mdt)
    yw_ref[:, padl + M:] = jnp.zeros((Cout, wide - padl - M), mdt)

    for b in range(B):
        # Folded BatchNorm: one mul + one add per element, in f32.
        normed = (y_ref[b].astype(jnp.float32) * scale_ref[...]
                  + shift_ref[...])                          # (Cout, M) f32
        yw_ref[:, padl:padl + M] = normed.astype(mdt)
        acc = jnp.zeros((Cout, M), jnp.float32)
        for k, off in enumerate(taps):
            tap = yw_ref[:, padl + off:padl + off + M] * mask_ref[k:k + 1, :]
            acc = acc + jnp.dot(w2_ref[:, k * Cout:(k + 1) * Cout], tap,
                                preferred_element_type=jnp.float32)
        acc = jnp.maximum(acc + b2_ref[...], 0.0)            # bias + ReLU
        o_ref[b] = acc.astype(o_ref.dtype)                   # lane-dense store


# --------------------------------------------------------------------------
# Wrapper: two pallas_calls over batch blocks, BN statistic folding.
# --------------------------------------------------------------------------
def block_forward(x_nchw, w1_oihw, b1, gamma, beta, w2_oihw, b2,
                  matmul_dtype=jnp.bfloat16, b_blk=None):
    """Block forward. x_nchw: (N, Cin, H, W) f32. Returns (N, Cout, H, W) f32.

    matmul_dtype: dtype of MXU operands AND of the pass-1/pass-2 intermediate
    `y` (bf16 is MXU-native and halves the dominant HBM round trip).  BN
    statistics, accumulation and elementwise math stay f32.
    """
    N, Cin, H, W = x_nchw.shape
    Cout = w1_oihw.shape[0]
    M = H * W
    padl = W + 1                     # shift margin (covers offsets +-(W+1))

    # Images per grid step: amortize per-step overhead while keeping >= 2
    # grid steps when possible so both v7x TensorCores stay busy.
    if b_blk is None:
        b_blk = 1
        for cand in (8, 4, 2):
            if N % cand == 0 and N // cand >= 2:
                b_blk = cand
                break
    assert N % b_blk == 0
    NB = N // b_blk

    # NCHW -> (N, Cin, H*W): a free reshape. No transpose / pad / cast pass.
    x = x_nchw.reshape(N, Cin, M)

    # OIHW -> (Cout, 9*Cin) tap-major, channel-minor weight matrices.
    w1m = jnp.transpose(w1_oihw, (0, 2, 3, 1)).reshape(Cout, 9 * Cin)
    w1m = w1m.astype(matmul_dtype)
    w2m = jnp.transpose(w2_oihw, (0, 2, 3, 1)).reshape(Cout, 9 * Cout)
    w2m = w2m.astype(matmul_dtype)

    # Flat-spatial tap offsets and per-tap validity masks (built on host).
    taps = []
    mask_np = np.zeros((9, H, W), np.float32)
    for ky in range(3):
        for kx in range(3):
            k = ky * 3 + kx
            taps.append((ky - 1) * W + (kx - 1))
            row_ok = ((np.arange(H) + ky - 1 >= 0) &
                      (np.arange(H) + ky - 1 < H)).astype(np.float32)
            col_ok = ((np.arange(W) + kx - 1 >= 0) &
                      (np.arange(W) + kx - 1 < W)).astype(np.float32)
            mask_np[k] = row_ok[:, None] * col_ok[None, :]
    mask = jnp.asarray(mask_np.reshape(9, M), matmul_dtype)
    taps = tuple(taps)

    cparams = pltpu.CompilerParams(
        dimension_semantics=("parallel",),            # megacore sharding
        vmem_limit_bytes=48 * 1024 * 1024)            # < 64 MiB v7x physical

    b1c = b1.reshape(Cout, 1).astype(jnp.float32)
    b2c = b2.reshape(Cout, 1).astype(jnp.float32)

    # ---- Pass 1: conv1 + ReLU + merged BN partial sums (grid over N/B) ----
    kern1 = functools.partial(_conv1_stats_kernel, taps=taps, padl=padl)
    y, stats = pl.pallas_call(
        kern1,
        grid=(NB,),
        in_specs=[
            pl.BlockSpec((b_blk, Cin, M), lambda n: (n, 0, 0)),
            pl.BlockSpec((Cout, 9 * Cin), lambda n: (0, 0)),
            pl.BlockSpec((Cout, 1), lambda n: (0, 0)),
            pl.BlockSpec((9, M), lambda n: (0, 0)),
        ],
        out_specs=[
            pl.BlockSpec((b_blk, Cout, M), lambda n: (n, 0, 0)),
            pl.BlockSpec((1, Cout, 2), lambda n: (n, 0, 0)),
        ],
        out_shape=[
            jax.ShapeDtypeStruct((N, Cout, M), matmul_dtype),   # bf16 y
            jax.ShapeDtypeStruct((NB, Cout, 2), jnp.float32),
        ],
        scratch_shapes=[pltpu.VMEM((Cin, 2 * padl + M), matmul_dtype)],
        compiler_params=cparams,
    )(x, w1m, b1c, mask)

    # ---- Global BN stats (over full N,H,W) -> folded scale/shift (tiny) ----
    cnt = jnp.float32(N * M)
    tot = jnp.sum(stats, axis=0)                      # (Cout, 2)
    mean = tot[:, 0] / cnt
    var = tot[:, 1] / cnt - mean * mean               # biased (training mode)
    scale = gamma.astype(jnp.float32) * jax.lax.rsqrt(var + EPS)
    shift = beta.astype(jnp.float32) - mean * scale

    # ---- Pass 2: folded BN + conv2 + ReLU (grid over N/B) ----
    kern2 = functools.partial(_bn_conv2_kernel, taps=taps, padl=padl)
    out = pl.pallas_call(
        kern2,
        grid=(NB,),
        in_specs=[
            pl.BlockSpec((b_blk, Cout, M), lambda n: (n, 0, 0)),
            pl.BlockSpec((Cout, 1), lambda n: (0, 0)),
            pl.BlockSpec((Cout, 1), lambda n: (0, 0)),
            pl.BlockSpec((Cout, 9 * Cout), lambda n: (0, 0)),
            pl.BlockSpec((Cout, 1), lambda n: (0, 0)),
            pl.BlockSpec((9, M), lambda n: (0, 0)),
        ],
        out_specs=pl.BlockSpec((b_blk, Cout, M), lambda n: (n, 0, 0)),
        out_shape=jax.ShapeDtypeStruct((N, Cout, M), jnp.float32),
        scratch_shapes=[pltpu.VMEM((Cout, 2 * padl + M), matmul_dtype)],
        compiler_params=cparams,
    )(y, scale.reshape(Cout, 1), shift.reshape(Cout, 1), w2m, b2c, mask)

    # (N, Cout, H*W) is already NCHW-flat: free reshape, no transpose.
    return out.reshape(N, Cout, H, W)


# --------------------------------------------------------------------------
# Pure-JAX reference (mirrors the PyTorch module in training mode).
# --------------------------------------------------------------------------
def ref_forward(x_nchw, w1_oihw, b1, gamma, beta, w2_oihw, b2):
    dn = ('NCHW', 'OIHW', 'NCHW')
    y = jax.lax.conv_general_dilated(x_nchw, w1_oihw, (1, 1),
                                     ((1, 1), (1, 1)), dimension_numbers=dn)
    y = y + b1[None, :, None, None]
    y = jnp.maximum(y, 0.0)
    mean = jnp.mean(y, axis=(0, 2, 3), keepdims=True)
    var = jnp.mean((y - mean) ** 2, axis=(0, 2, 3), keepdims=True)
    y = (y - mean) * jax.lax.rsqrt(var + EPS)
    y = y * gamma[None, :, None, None] + beta[None, :, None, None]
    y = jax.lax.conv_general_dilated(y, w2_oihw, (1, 1),
                                     ((1, 1), (1, 1)), dimension_numbers=dn)
    y = y + b2[None, :, None, None]
    return jnp.maximum(y, 0.0)


if __name__ == "__main__":
    N, Cin, Cout, H, W = 2, 4, 8, 16, 16

    key = jax.random.PRNGKey(0)
    kx, kw1, kb1, kw2, kb2 = jax.random.split(key, 5)

    x = jax.random.normal(kx, (N, Cin, H, W), jnp.float32)

    # Deterministic synthetic parameters (PyTorch layouts: OIHW weights).
    w1 = jax.random.normal(kw1, (Cout, Cin, 3, 3), jnp.float32) * 0.1
    b1 = jax.random.normal(kb1, (Cout,), jnp.float32) * 0.1
    gamma = jnp.ones((Cout,), jnp.float32)     # BatchNorm2d default affine
    beta = jnp.zeros((Cout,), jnp.float32)
    w2 = jax.random.normal(kw2, (Cout, Cout, 3, 3), jnp.float32) * 0.1
    b2 = jax.random.normal(kb2, (Cout,), jnp.float32) * 0.1

    ref = ref_forward(x, w1, b1, gamma, beta, w2, b2)

    # f32 MXU path: tight correctness check against the pure-JAX reference.
    out32 = jax.block_until_ready(
        block_forward(x, w1, b1, gamma, beta, w2, b2,
                      matmul_dtype=jnp.float32))
    assert out32.shape == (N, Cout, H, W)
    assert jnp.allclose(out32, ref, atol=2e-4, rtol=2e-4), (
        f"f32 max abs err = {jnp.max(jnp.abs(out32 - ref))}")

    # bf16 MXU + bf16 intermediate path (production default); looser tolerance
    # reflects bf16 operand/intermediate rounding (accumulation stays f32).
    out16 = jax.block_until_ready(
        block_forward(x, w1, b1, gamma, beta, w2, b2,
                      matmul_dtype=jnp.bfloat16))
    assert jnp.allclose(out16, ref, atol=1.5e-1, rtol=1.5e-1), (
        f"bf16 max abs err = {jnp.max(jnp.abs(out16 - ref))}")

    print("KERNEL_OK")
</pallas_src>

<mosaic_0001>
module attributes {stable_mosaic.version = 11 : i64} {
  func.func @_conv1_stats_kernel(%arg0: i32, %arg1: memref<1x4x256xf32, #tpu.memory_space<vmem>>, %arg2: memref<8x36xf32, #tpu.memory_space<vmem>>, %arg3: memref<8x1xf32, #tpu.memory_space<vmem>>, %arg4: memref<9x256xf32, #tpu.memory_space<vmem>>, %arg5: memref<1x8x256xf32, #tpu.memory_space<vmem>>, %arg6: memref<1x8x2xf32, #tpu.memory_space<vmem>>, %arg7: memref<4x290xf32, #tpu.memory_space<vmem>>) attributes {dimension_semantics = [#tpu.dimension_semantics<parallel>], iteration_bounds = array<i64: 2>, scalar_prefetch = 0 : i64, scratch_operands = 1 : i64, tpu.core_type = #tpu.core_type<tc>, window_params = [{transform_indices = @transform_0, window_bounds = array<i64: 1, 4, 256>}, {pipeline_mode = #tpu.pipeline_mode<synchronous>, transform_indices = @transform_1, window_bounds = array<i64: 8, 36>}, {pipeline_mode = #tpu.pipeline_mode<synchronous>, transform_indices = @transform_2, window_bounds = array<i64: 8, 1>}, {pipeline_mode = #tpu.pipeline_mode<synchronous>, transform_indices = @transform_3, window_bounds = array<i64: 9, 256>}, {transform_indices = @transform_4, window_bounds = array<i64: 1, 8, 256>}, {transform_indices = @transform_5, window_bounds = array<i64: 1, 8, 2>}]} {
    %cst = arith.constant 0.000000e+00 : f32
    %0 = vector.broadcast %cst : f32 to vector<4x17xf32>
    %c0 = arith.constant 0 : index
    %c0_0 = arith.constant 0 : index
    %1 = vector.load %arg7[%c0, %c0_0] : memref<4x290xf32, #tpu.memory_space<vmem>>, vector<4x17xf32>
    tpu.vector_store %arg7[%c0, %c0_0], %0 {strides = array<i32>} : memref<4x290xf32, #tpu.memory_space<vmem>>, vector<4x17xf32>,
    %cst_1 = arith.constant 0.000000e+00 : f32
    %2 = vector.broadcast %cst_1 : f32 to vector<4x17xf32>
    %c0_2 = arith.constant 0 : index
    %c273 = arith.constant 273 : index
    %3 = vector.load %arg7[%c0_2, %c273] : memref<4x290xf32, #tpu.memory_space<vmem>>, vector<4x17xf32>
    tpu.vector_store %arg7[%c0_2, %c273], %2 {strides = array<i32>} : memref<4x290xf32, #tpu.memory_space<vmem>>, vector<4x17xf32>,
    %cst_3 = arith.constant 0.000000e+00 : f32
    %4 = vector.broadcast %cst_3 : f32 to vector<8x1xf32>
    %cst_4 = arith.constant 0.000000e+00 : f32
    %5 = vector.broadcast %cst_4 : f32 to vector<8x1xf32>
    %c0_5 = arith.constant 0 : index
    %c0_6 = arith.constant 0 : index
    %c0_7 = arith.constant 0 : index
    %6 = vector.load %arg1[%c0_5, %c0_6, %c0_7] : memref<1x4x256xf32, #tpu.memory_space<vmem>>, vector<1x4x256xf32>
    %7 = vector.shape_cast %6 : vector<1x4x256xf32> to vector<4x256xf32>
    %c0_8 = arith.constant 0 : index
    %c17 = arith.constant 17 : index
    %8 = vector.load %arg7[%c0_8, %c17] : memref<4x290xf32, #tpu.memory_space<vmem>>, vector<4x256xf32>
    tpu.vector_store %arg7[%c0_8, %c17], %7 {strides = array<i32>} : memref<4x290xf32, #tpu.memory_space<vmem>>, vector<4x256xf32>,
    %cst_9 = arith.constant 0.000000e+00 : f32
    %9 = vector.broadcast %cst_9 : f32 to vector<8x256xf32>
    %c0_10 = arith.constant 0 : index
    %c0_11 = arith.constant 0 : index
    %10 = vector.load %arg7[%c0_10, %c0_11] : memref<4x290xf32, #tpu.memory_space<vmem>>, vector<4x256xf32>
    %c0_12 = arith.constant 0 : index
    %c0_13 = arith.constant 0 : index
    %11 = vector.load %arg4[%c0_12, %c0_13] : memref<9x256xf32, #tpu.memory_space<vmem>>, vector<1x256xf32>
    %12 = vector.broadcast %11 : vector<1x256xf32> to vector<4x256xf32>
    %13 = arith.mulf %10, %12 : vector<4x256xf32>
    %c0_14 = arith.constant 0 : index
    %c0_15 = arith.constant 0 : index
    %14 = vector.load %arg2[%c0_14, %c0_15] : memref<8x36xf32, #tpu.memory_space<vmem>>, vector<8x4xf32>
    %cst_16 = arith.constant dense<0.000000e+00> : vector<8x256xf32>
    %15 = tpu.matmul %14, %13, %cst_16 {dimension_numbers = #tpu.dot_dimension_numbers<[1], [0], [0], [1], [0, 0, 1, 1], [], []>} : vector<8x4xf32>, vector<4x256xf32>, vector<8x256xf32> -> vector<8x256xf32>
    %16 = arith.addf %9, %15 : vector<8x256xf32>
    %c0_17 = arith.constant 0 : index
    %c1 = arith.constant 1 : index
    %17 = vector.load %arg7[%c0_17, %c1] : memref<4x290xf32, #tpu.memory_space<vmem>>, vector<4x256xf32>
    %c1_18 = arith.constant 1 : index
    %c0_19 = arith.constant 0 : index
    %18 = vector.load %arg4[%c1_18, %c0_19] : memref<9x256xf32, #tpu.memory_space<vmem>>, vector<1x256xf32>
    %19 = vector.broadcast %18 : vector<1x256xf32> to vector<4x256xf32>
    %20 = arith.mulf %17, %19 : vector<4x256xf32>
    %c0_20 = arith.constant 0 : index
    %c4 = arith.constant 4 : index
    %21 = vector.load %arg2[%c0_20, %c4] : memref<8x36xf32, #tpu.memory_space<vmem>>, vector<8x4xf32>
    %cst_21 = arith.constant dense<0.000000e+00> : vector<8x256xf32>
    %22 = tpu.matmul %21, %20, %cst_21 {dimension_numbers = #tpu.dot_dimension_numbers<[1], [0], [0], [1], [0, 0, 1, 1], [], []>} : vector<8x4xf32>, vector<4x256xf32>, vector<8x256xf32> -> vector<8x256xf32>
    %23 = arith.addf %16, %22 : vector<8x256xf32>
    %c0_22 = arith.constant 0 : index
    %c2 = arith.constant 2 : index
    %24 = vector.load %arg7[%c0_22, %c2] : memref<4x290xf32, #tpu.memory_space<vmem>>, vector<4x256xf32>
    %c2_23 = arith.constant 2 : index
    %c0_24 = arith.constant 0 : index
    %25 = vector.load %arg4[%c2_23, %c0_24] : memref<9x256xf32, #tpu.memory_space<vmem>>, vector<1x256xf32>
    %26 = vector.broadcast %25 : vector<1x256xf32> to vector<4x256xf32>
    %27 = arith.mulf %24, %26 : vector<4x256xf32>
    %c0_25 = arith.constant 0 : index
    %c8 = arith.constant 8 : index
    %28 = vector.load %arg2[%c0_25, %c8] : memref<8x36xf32, #tpu.memory_space<vmem>>, vector<8x4xf32>
    %cst_26 = arith.constant dense<0.000000e+00> : vector<8x256xf32>
    %29 = tpu.matmul %28, %27, %cst_26 {dimension_numbers = #tpu.dot_dimension_numbers<[1], [0], [0], [1], [0, 0, 1, 1], [], []>} : vector<8x4xf32>, vector<4x256xf32>, vector<8x256xf32> -> vector<8x256xf32>
    %30 = arith.addf %23, %29 : vector<8x256xf32>
    %c0_27 = arith.constant 0 : index
    %c16 = arith.constant 16 : index
    %31 = vector.load %arg7[%c0_27, %c16] : memref<4x290xf32, #tpu.memory_space<vmem>>, vector<4x256xf32>
    %c3 = arith.constant 3 : index
    %c0_28 = arith.constant 0 : index
    %32 = vector.load %arg4[%c3, %c0_28] : memref<9x256xf32, #tpu.memory_space<vmem>>, vector<1x256xf32>
    %33 = vector.broadcast %32 : vector<1x256xf32> to vector<4x256xf32>
    %34 = arith.mulf %31, %33 : vector<4x256xf32>
    %c0_29 = arith.constant 0 : index
    %c12 = arith.constant 12 : index
    %35 = vector.load %arg2[%c0_29, %c12] : memref<8x36xf32, #tpu.memory_space<vmem>>, vector<8x4xf32>
    %cst_30 = arith.constant dense<0.000000e+00> : vector<8x256xf32>
    %36 = tpu.matmul %35, %34, %cst_30 {dimension_numbers = #tpu.dot_dimension_numbers<[1], [0], [0], [1], [0, 0, 1, 1], [], []>} : vector<8x4xf32>, vector<4x256xf32>, vector<8x256xf32> -> vector<8x256xf32>
    %37 = arith.addf %30, %36 : vector<8x256xf32>
    %c0_31 = arith.constant 0 : index
    %c17_32 = arith.constant 17 : index
    %38 = vector.load %arg7[%c0_31, %c17_32] : memref<4x290xf32, #tpu.memory_space<vmem>>, vector<4x256xf32>
    %c4_33 = arith.constant 4 : index
    %c0_34 = arith.constant 0 : index
    %39 = vector.load %arg4[%c4_33, %c0_34] : memref<9x256xf32, #tpu.memory_space<vmem>>, vector<1x256xf32>
    %40 = vector.broadcast %39 : vector<1x256xf32> to vector<4x256xf32>
    %41 = arith.mulf %38, %40 : vector<4x256xf32>
    %c0_35 = arith.constant 0 : index
    %c16_36 = arith.constant 16 : index
    %42 = vector.load %arg2[%c0_35, %c16_36] : memref<8x36xf32, #tpu.memory_space<vmem>>, vector<8x4xf32>
    %cst_37 = arith.constant dense<0.000000e+00> : vector<8x256xf32>
    %43 = tpu.matmul %42, %41, %cst_37 {dimension_numbers = #tpu.dot_dimension_numbers<[1], [0], [0], [1], [0, 0, 1, 1], [], []>} : vector<8x4xf32>, vector<4x256xf32>, vector<8x256xf32> -> vector<8x256xf32>
    %44 = arith.addf %37, %43 : vector<8x256xf32>
    %c0_38 = arith.constant 0 : index
    %c18 = arith.constant 18 : index
    %45 = vector.load %arg7[%c0_38, %c18] : memref<4x290xf32, #tpu.memory_space<vmem>>, vector<4x256xf32>
    %c5 = arith.constant 5 : index
    %c0_39 = arith.constant 0 : index
    %46 = vector.load %arg4[%c5, %c0_39] : memref<9x256xf32, #tpu.memory_space<vmem>>, vector<1x256xf32>
    %47 = vector.broadcast %46 : vector<1x256xf32> to vector<4x256xf32>
    %48 = arith.mulf %45, %47 : vector<4x256xf32>
    %c0_40 = arith.constant 0 : index
    %c20 = arith.constant 20 : index
    %49 = vector.load %arg2[%c0_40, %c20] : memref<8x36xf32, #tpu.memory_space<vmem>>, vector<8x4xf32>
    %cst_41 = arith.constant dense<0.000000e+00> : vector<8x256xf32>
    %50 = tpu.matmul %49, %48, %cst_41 {dimension_numbers = #tpu.dot_dimension_numbers<[1], [0], [0], [1], [0, 0, 1, 1], [], []>} : vector<8x4xf32>, vector<4x256xf32>, vector<8x256xf32> -> vector<8x256xf32>
    %51 = arith.addf %44, %50 : vector<8x256xf32>
    %c0_42 = arith.constant 0 : index
    %c32 = arith.constant 32 : index
    %52 = vector.load %arg7[%c0_42, %c32] : memref<4x290xf32, #tpu.memory_space<vmem>>, vector<4x256xf32>
    %c6 = arith.constant 6 : index
    %c0_43 = arith.constant 0 : index
    %53 = vector.load %arg4[%c6, %c0_43] : memref<9x256xf32, #tpu.memory_space<vmem>>, vector<1x256xf32>
    %54 = vector.broadcast %53 : vector<1x256xf32> to vector<4x256xf32>
    %55 = arith.mulf %52, %54 : vector<4x256xf32>
    %c0_44 = arith.constant 0 : index
    %c24 = arith.constant 24 : index
    %56 = vector.load %arg2[%c0_44, %c24] : memref<8x36xf32, #tpu.memory_space<vmem>>, vector<8x4xf32>
    %cst_45 = arith.constant dense<0.000000e+00> : vector<8x256xf32>
    %57 = tpu.matmul %56, %55, %cst_45 {dimension_numbers = #tpu.dot_dimension_numbers<[1], [0], [0], [1], [0, 0, 1, 1], [], []>} : vector<8x4xf32>, vector<4x256xf32>, vector<8x256xf32> -> vector<8x256xf32>
    %58 = arith.addf %51, %57 : vector<8x256xf32>
    %c0_46 = arith.constant 0 : index
    %c33 = arith.constant 33 : index
    %59 = vector.load %arg7[%c0_46, %c33] : memref<4x290xf32, #tpu.memory_space<vmem>>, vector<4x256xf32>
    %c7 = arith.constant 7 : index
    %c0_47 = arith.constant 0 : index
    %60 = vector.load %arg4[%c7, %c0_47] : memref<9x256xf32, #tpu.memory_space<vmem>>, vector<1x256xf32>
    %61 = vector.broadcast %60 : vector<1x256xf32> to vector<4x256xf32>
    %62 = arith.mulf %59, %61 : vector<4x256xf32>
    %c0_48 = arith.constant 0 : index
    %c28 = arith.constant 28 : index
    %63 = vector.load %arg2[%c0_48, %c28] : memref<8x36xf32, #tpu.memory_space<vmem>>, vector<8x4xf32>
    %cst_49 = arith.constant dense<0.000000e+00> : vector<8x256xf32>
    %64 = tpu.matmul %63, %62, %cst_49 {dimension_numbers = #tpu.dot_dimension_numbers<[1], [0], [0], [1], [0, 0, 1, 1], [], []>} : vector<8x4xf32>, vector<4x256xf32>, vector<8x256xf32> -> vector<8x256xf32>
    %65 = arith.addf %58, %64 : vector<8x256xf32>
    %c0_50 = arith.constant 0 : index
    %c34 = arith.constant 34 : index
    %66 = vector.load %arg7[%c0_50, %c34] : memref<4x290xf32, #tpu.memory_space<vmem>>, vector<4x256xf32>
    %c8_51 = arith.constant 8 : index
    %c0_52 = arith.constant 0 : index
    %67 = vector.load %arg4[%c8_51, %c0_52] : memref<9x256xf32, #tpu.memory_space<vmem>>, vector<1x256xf32>
    %68 = vector.broadcast %67 : vector<1x256xf32> to vector<4x256xf32>
    %69 = arith.mulf %66, %68 : vector<4x256xf32>
    %c0_53 = arith.constant 0 : index
    %c32_54 = arith.constant 32 : index
    %70 = vector.load %arg2[%c0_53, %c32_54] : memref<8x36xf32, #tpu.memory_space<vmem>>, vector<8x4xf32>
    %cst_55 = arith.constant dense<0.000000e+00> : vector<8x256xf32>
    %71 = tpu.matmul %70, %69, %cst_55 {dimension_numbers = #tpu.dot_dimension_numbers<[1], [0], [0], [1], [0, 0, 1, 1], [], []>} : vector<8x4xf32>, vector<4x256xf32>, vector<8x256xf32> -> vector<8x256xf32>
    %72 = arith.addf %65, %71 : vector<8x256xf32>
    %c0_56 = arith.constant 0 : index
    %c0_57 = arith.constant 0 : index
    %73 = vector.load %arg3[%c0_56, %c0_57] : memref<8x1xf32, #tpu.memory_space<vmem>>, vector<8x1xf32>
    %74 = vector.broadcast %73 : vector<8x1xf32> to vector<8x256xf32>
    %75 = arith.addf %72, %74 : vector<8x256xf32>
    %cst_58 = arith.constant 0.000000e+00 : f32
    %76 = vector.broadcast %cst_58 : f32 to vector<8x256xf32>
    %77 = arith.maximumf %75, %76 : vector<8x256xf32>
    %c0_59 = arith.constant 0 : index
    %c0_60 = arith.constant 0 : index
    %c0_61 = arith.constant 0 : index
    %78 = vector.load %arg5[%c0_59, %c0_60, %c0_61] : memref<1x8x256xf32, #tpu.memory_space<vmem>>, vector<1x8x256xf32>
    %79 = vector.shape_cast %78 : vector<1x8x256xf32> to vector<8x256xf32>
    %80 = vector.shape_cast %77 : vector<8x256xf32> to vector<1x8x256xf32>
    tpu.vector_store %arg5[%c0_59, %c0_60, %c0_61], %80 {strides = array<i32>} : memref<1x8x256xf32, #tpu.memory_space<vmem>>, vector<1x8x256xf32>,
    %cst_62 = arith.constant dense<0.000000e+00> : vector<8xf32>
    %81 = vector.multi_reduction <add>, %77, %cst_62 [1] : vector<8x256xf32> to vector<8xf32>
    %82 = vector.shape_cast %81 : vector<8xf32> to vector<8x1xf32>
    %83 = arith.addf %4, %82 : vector<8x1xf32>
    %84 = arith.mulf %77, %77 : vector<8x256xf32>
    %cst_63 = arith.constant dense<0.000000e+00> : vector<8xf32>
    %85 = vector.multi_reduction <add>, %84, %cst_63 [1] : vector<8x256xf32> to vector<8xf32>
    %86 = vector.shape_cast %85 : vector<8xf32> to vector<8x1xf32>
    %87 = arith.addf %5, %86 : vector<8x1xf32>
    %88 = tpu.concatenate %83, %87 in 1 : vector<8x1xf32>, vector<8x1xf32> -> vector<8x2xf32>
    %c0_64 = arith.constant 0 : index
    %c0_65 = arith.constant 0 : index
    %c0_66 = arith.constant 0 : index
    %89 = vector.load %arg6[%c0_64, %c0_65, %c0_66] : memref<1x8x2xf32, #tpu.memory_space<vmem>>, vector<1x8x2xf32>
    %90 = vector.shape_cast %89 : vector<1x8x2xf32> to vector<8x2xf32>
    %91 = vector.shape_cast %88 : vector<8x2xf32> to vector<1x8x2xf32>
    tpu.vector_store %arg6[%c0_64, %c0_65, %c0_66], %91 {strides = array<i32>} : memref<1x8x2xf32, #tpu.memory_space<vmem>>, vector<1x8x2xf32>,
    return
  }
  func.func @transform_0(%arg0: i32) -> (i32, i32, i32) {
    %c0_i32 = arith.constant 0 : i32
    %c0_i32_0 = arith.constant 0 : i32
    %c0_i32_1 = arith.constant 0 : i32
    return %arg0, %c0_i32, %c0_i32_0 : i32, i32, i32
  }
  func.func @transform_1(%arg0: i32) -> (i32, i32) {
    %c0_i32 = arith.constant 0 : i32
    %c0_i32_0 = arith.constant 0 : i32
    %c0_i32_1 = arith.constant 0 : i32
    return %c0_i32, %c0_i32_0 : i32, i32
  }
  func.func @transform_2(%arg0: i32) -> (i32, i32) {
    %c0_i32 = arith.constant 0 : i32
    %c0_i32_0 = arith.constant 0 : i32
    %c0_i32_1 = arith.constant 0 : i32
    return %c0_i32, %c0_i32_0 : i32, i32
  }
  func.func @transform_3(%arg0: i32) -> (i32, i32) {
    %c0_i32 = arith.constant 0 : i32
    %c0_i32_0 = arith.constant 0 : i32
    %c0_i32_1 = arith.constant 0 : i32
    return %c0_i32, %c0_i32_0 : i32, i32
  }
  func.func @transform_4(%arg0: i32) -> (i32, i32, i32) {
    %c0_i32 = arith.constant 0 : i32
    %c0_i32_0 = arith.constant 0 : i32
    %c0_i32_1 = arith.constant 0 : i32
    return %arg0, %c0_i32, %c0_i32_0 : i32, i32, i32
  }
  func.func @transform_5(%arg0: i32) -> (i32, i32, i32) {
    %c0_i32 = arith.constant 0 : i32
    %c0_i32_0 = arith.constant 0 : i32
    %c0_i32_1 = arith.constant 0 : i32
    return %arg0, %c0_i32, %c0_i32_0 : i32, i32, i32
  }
}

</mosaic_0001>

<bundles_post_ra>
// kernel: tpu_custom_call.1
= control target key start
LH: loop header
LB: loop body
LE: loop exit
PB: predicated region body
PF: predicated region fallthrough
CT: control target
= control target key end

     0   :  { %11 = vsyncpa [#allocation4], 0  ;;  %s2050_s0 = inlined_call_operand.hbm [shape: f32[2,4,256], index: 0, kind: input, shape index: {}]   ;;  %s2051_s1 = inlined_call_operand.vmem [shape: f32[8,36], index: 1, kind: input, shape index: {}]   ;;  %s2052_s2 = inlined_call_operand.vmem [shape: f32[8,1], index: 2, kind: input, shape index: {}]   ;;  %s2053_s3 = inlined_call_operand.hbm [shape: f32[9,256], index: 3, kind: input, shape index: {}]   ;;  %s2054_s4 = inlined_call_operand.hbm [shape: f32[2,8,256], index: 4, kind: output, shape index: {0}]   ;;  %s2055_s5 = inlined_call_operand.vmem [shape: f32[2,8,2], index: 5, kind: output, shape index: {1}]  }
   0x1   :  { %13 = vsyncpa [#allocation4 + $0x1], 0 }
   0x2   :  { %14 = vsyncpa [#allocation7], 0 }
   0x3   :  { %15 = vsyncpa [#allocation5], 0 }
   0x4   :  { %17 = vsyncpa [#allocation5 + $0x1], 0  ;;  %s1784_s18 = smov 0   ;;  %s1786_s19 = smov 0  }
   0x5   :  { %s1788_s20 = smov 0   ;;  %s1790_s21 = smov 0  }
   0x6 LB: > { %s1805_s22 = sadd.s32 4294967295, %s1723_s21   ;;  %s1470_s23 = sadd.s32 4294967294, %s1723_s21   ;;  %s1723_s21 = sphi %s1790_s21, %s2077_s21   ;;  %s1719_s20 = sphi %s1788_s20, %s2076_s20   ;;  %s1715_s19 = sphi %s1786_s19, %s2075_s19   ;;  %s1711_s18 = sphi %s1784_s18, %s2074_s18  }
   0x7   : > { %p43_p0 = scmp.ne.s32.totalorder %s1715_s19, %s1711_s18  ;;  %p2056_p1 = scmp.eq.s32.totalorder %s1805_s22, 0 }
   0x8   : > { %p136_p3 = scmp.eq.s32.totalorder %s1470_s23, 1  ;;  %p1471_p5 = scmp.ge.s32.totalorder %s1723_s21, 1 }
   0x9   : > { %p1814_p4 = por %p2056_p1, %p43_p0  ;;  %p169_p7 = scmp.lt.s32.totalorder %s1723_s21, 3 }
   0xa   : > { %p1819_p6 = por %p136_p3, %p43_p0  ;;  %s1725_s27 = smov [#allocation6]  }
   0xb   : > { %s2060_s24 = scalar_select %p1814_p4, 1, 0 }
   0xc   : > { %s2061_s25 = scalar_select %p1819_p6, 1, 0 }
   0xd   : > { %p1824_p8 = pnand %p1471_p5, %p169_p7  ;;  %s187_s28 = sshll.u32 %s1725_s27, 4  ;;  %s188_s28 = int_to_ptr.vmem [resolvable:$true] %s187_s28 }
   0xe   : > { %s1838_s30 = sadd.s32 1, %s1723_s21   ;;  %s30_s6 = sadd.s32 1, %s1719_s20 }
   0xf   : > { %s2062_s26 = scalar_select %p1824_p8, 1, 0 }
  0x10   : > { %p1524_p9 = pneg %p1824_p8  ;;  %s27_s7 = ssub.s32 %s1723_s21, %s1838_s30 }
  0x11   : > { %s1612_s8 = scalar_lea.vmem %s188_s28, 512  ;;  %p1620_p5 = scmp.lt.s32.totalorder %s188_s28, %s188_s28 }
  0x12   : > { %p1833_p11 = pnand %p1524_p9, %p2056_p1  ;;  %p1613_p13 = scmp.ne.s32.totalorder %s188_s28, %s1612_s8 }
  0x13   : > { %p1621_p7 = scmp.lt.s32.totalorder %s1612_s8, %s1612_s8 }
  0x14   : > { %p1603_p12 = pneg %p1833_p11 }
  0x15   : > { %p1622_p10 = por %p1621_p7, %p1620_p5 }
  0x16   : > { %p1615_p0 = pnand %p1613_p13, %p1603_p12 }
  0x18   : > { %p1616_p3 = pneg %p1615_p0 }
  0x1a   : > { %p1623_p2 = pnand %p1622_p10, %p1616_p3 }
  0x1c   : > { %1626 = shalt.err (!%p1623_p2)
}
  0x1d   : > { %s1726_s9 = smov 256   ;;  %s1727_s10 = smov 16  }
  0x1e   : > { %1527 = dma.hbm_to_vmem [thread:$0]  (!%p1833_p11), %s2053_s3, 512, %s188_s28, [#allocation7], %s1726_s9, %s1726_s9, %s1727_s10  }
  0x1f   : > { %p28_p9 = scmp.eq.s32.totalorder %s27_s7, 0  ;;  %p37_p12 = scmp.ne.s32.totalorder %s1719_s20, %s1715_s19 }
  0x20   : > { %p38_p10 = scmp.eq.s32.totalorder %s1723_s21, 0  ;;  %p1537_p2 = scmp.lt.s32.totalorder %s1723_s21, 2 }
  0x21   : > { %s1855_s13 = scalar_select %p28_p9, %s1719_s20, %s30_s6  }
  0x22   : > { %p39_p13 = por %p38_p10, %p37_p12  ;;  %p2064_p0 = scmp.eq.s32.totalorder %s1805_s22, 1 }
  0x23   : > { %s201_s15 = sand.u32 1, %s1719_s20   ;;  %s1514_s16 = sshll.u32 %s1723_s21, 7 }
  0x24   : > { %p1859_p3 = por %p2064_p0, %p37_p12  ;;  %s1474_s17 = sshll.u32 %s201_s15, 3 }
  0x25   : > { %s1868_s29 = scalar_lea.hbm %s2050_s0, %s1514_s16  ;;  %s205_s28 = scalar_lea.vmem [#allocation3], %s1474_s17 }
  0x26   : > { %s2065_s14 = scalar_select %p1859_p3, 1, 0 }
  0x27   : > { %s213_s6 = sshll.u32 %s205_s28, 4  ;;  %p1870_p11 = pnand %p1537_p2, %p39_p13  ;;  %s214_s6 = int_to_ptr.vmem [resolvable:$true] %s213_s6 }
  0x28   : > { %s202_s8 = scalar_lea.sflag [#allocation4], %s201_s15  ;;  %s1627_s9 = scalar_lea.hbm %s1868_s29, 128 }
  0x29   : > { %p1628_p5 = scmp.ne.s32.totalorder %s1868_s29, %s1627_s9  ;;  %p1629_p7 = pneg %p1870_p11 }
  0x2a   : > { %s1632_s12 = scalar_lea.hbm %s2050_s0, 256  ;;  %p1633_p10 = scmp.lt.s32.totalorder %s1868_s29, %s2050_s0 }
  0x2b   : > { %p1630_p9 = pnand %p1629_p7, %p1628_p5  ;;  %p1634_p2 = scmp.lt.s32.totalorder %s1632_s12, %s1627_s9 }
  0x2d   : > { %p1631_p12 = pneg %p1630_p9  ;;  %p1635_p13 = por %p1634_p2, %p1633_p10 }
  0x2f   : > { %p1636_p0 = pnand %p1635_p13, %p1631_p12 }
  0x31   : > { %1639 = shalt.err (!%p1636_p0)
}
  0x32   : > { %s1640_s23 = scalar_lea.vmem %s214_s6, 128  ;;  %s1728_s15 = smov [#allocation3]  }
  0x33   : > { %p1641_p1 = scmp.ne.s32.totalorder %s214_s6, %s1640_s23  ;;  %s1645_s27 = sshll.u32 %s1728_s15, 4  ;;  %s1646_s27 = int_to_ptr.vmem [resolvable:$false] %s1645_s27 }
  0x34   : > { %s1647_s28 = scalar_lea.vmem %s1646_s27, 256  ;;  %p1648_p5 = scmp.lt.s32.totalorder %s214_s6, %s1646_s27 }
  0x35   : > { %p1643_p6 = pnand %p1641_p1, %p1629_p7  ;;  %p1649_p9 = scmp.lt.s32.totalorder %s1647_s28, %s1640_s23 }
  0x37   : > { %p1644_p3 = pneg %p1643_p6  ;;  %p1650_p4 = por %p1649_p9, %p1648_p5 }
  0x39   : > { %p1651_p8 = pnand %p1650_p4, %p1644_p3 }
  0x3b   : > { %1654 = shalt.err (!%p1651_p8)
}
  0x3c   : > { %1531 = dma.hbm_to_vmem [thread:$0]  (!%p1870_p11), %s1868_s29, 128, %s214_s6, %s202_s8  }
  0x3d   : > { %p2067_p12 = scmp.ne.s32.totalorder %s2062_s26, 0 }
  0x3e   : > { %s1891_s9 = sand.u32 (!%p2067_p12), 1, %s1715_s19   ;;  %p2068_p1 = scmp.ne.s32.totalorder (!%p2067_p12), %s2060_s24, 0 }
  0x3f   : > { %222 = sbr.rel (%p2067_p12) target bundleno = 727 (0x2d7), region = 36  ;;  %s1478_s10 = sshll.u32 (!%p2067_p12), %s1891_s9, 3 }
  0x40   : > { %s225_s11 = scalar_lea.sflag (!%p2067_p12), [#allocation4], %s1891_s9  ;;  %s228_s12 = scalar_lea.vmem (!%p2067_p12), [#allocation3], %s1478_s10 }
  0x44   : > { %1698 = dma.done.wait (%p2068_p1), %s225_s11, 128  }
  0x45   : > { %1700 = vsyncadd (%p2068_p1), %s225_s11, 4294967168  ;;  %p2069_p4 = scmp.eq.s32.totalorder %s1805_s22, 0 }
  0x47   : > { %1702 = dma.done.wait (%p2069_p4), [#allocation7], 512   ;;  %p2070_p6 = pmov %p2069_p4 }
  0x48   : > { %v288_v0 = vlaneseq  ;;  %vm267_vm0 = vcmask 134144   ;;  %vm269_vm1 = vcmask 273544   ;;  %v1729_v1 = vmov 0.0   ;;  %v271_v5 = vld [vmem:[%s228_s12] sm:$0xff]  ;;  %s1730_s24 = smov 17   ;;  %s1731_s26 = smov 2  }
  0x49   : > { %1704 = vsyncadd (%p2070_p6), [#allocation7], 4294966784  ;;  %268 = vst.msk [vmem:[#allocation2] sm:$0xf] %vm267_vm0, %v1729_v1  ;;  %488 = vmatprep.mubr.f32.mxu1 %v1729_v1  ;;  %409 = vmatprep.mubr.f32.mxu0 %v1729_v1  ;;  %s1732_s29 = smov 1   ;;  %s1733_s6 = smov 16  }
  0x4a   : > { %v289_v2 = vshrl.u32 %v288_v0, 7  ;;  %270 = vst.msk [vmem:[#allocation2 + $0x8] sm:$0xf] %vm269_vm1, %v1729_v1  ;;  %v498_v6 = vld [vmem:[#allocation6 + $0x2] ss:$8 sm:$0x3]  ;;  %273 = vrot.lane.b32.xlu0 %v271_v5, %s1730_s24 }
  0x4b   : > { %v302_v9 = vld [vmem:[#allocation6 + $0x1] ss:$8 sm:$0x3]  ;;  %v616_v10 = vld [vmem:[#allocation6 + $0x3] ss:$8 sm:$0x3] }
  0x4c   : > { %v290_v3 = vsub.s32 0, %v289_v2  ;;  %v294_v4 = vsub.s32 1, %v289_v2  ;;  %v734_v15 = vld [vmem:[#allocation6 + $0x4] ss:$8 sm:$0x3]  ;;  %s1734_s7 = smov 18  }
  0x4d   : > { %v851_v16 = vld [vmem:[#allocation6 + $0x5] ss:$8 sm:$0x3]  ;;  %v969_v20 = vld [vmem:[#allocation6 + $0x6] ss:$8 sm:$0x3] }
  0x4e   : > { %v503_v7 = vrot.slane %v498_v6, %v290_v3  ;;  %v507_v8 = vrot.slane %v498_v6, %v294_v4  ;;  %v307_v11 = vrot.slane %v302_v9, %v290_v3  ;;  %v311_v12 = vrot.slane %v302_v9, %v294_v4  ;;  %v286_v25 = vld [vmem:[#allocation6] ss:$8 sm:$0x3]  ;;  %v1087_v29 = vld [vmem:[#allocation6 + $0x7] ss:$8 sm:$0x3] }
  0x4f   : > { %v621_v13 = vrot.slane %v616_v10, %v290_v3  ;;  %v625_v14 = vrot.slane %v616_v10, %v294_v4  ;;  %v739_v18 = vrot.slane %v734_v15, %v290_v3  ;;  %v743_v19 = vrot.slane %v734_v15, %v294_v4  ;;  %v1205_v30 = vld [vmem:[#allocation6 + $0x10] ss:$8 sm:$0x3]  ;;  %s1735_s8 = smov 32   ;;  %s1736_s16 = smov 33   ;;  %v1913_v42 = vld [vmem:[%s2051_s1] sm:$0xff] }
  0x50   : > { %v508_v17 = vcombine.low %v503_v7, %v507_v8  ;;  %v312_v21 = vcombine.low %v307_v11, %v311_v12  ;;  %v856_v23 = vrot.slane %v851_v16, %v290_v3  ;;  %v860_v24 = vrot.slane %v851_v16, %v294_v4  ;;  %s1737_s17 = smov 34   ;;  %s1738_s27 = smov 124  }
  0x51   : > { %v626_v22 = vcombine.low %v621_v13, %v625_v14  ;;  %v744_v26 = vcombine.low %v739_v18, %v743_v19  ;;  %v974_v27 = vrot.slane %v969_v20, %v290_v3  ;;  %v978_v28 = vrot.slane %v969_v20, %v294_v4  ;;  %s1739_s28 = smov 120   ;;  %s1740_s10 = smov 116  }
  0x52   : > { %509 = vrot.lane.b32.xlu1 %v508_v17, %s1731_s26  ;;  %313 = vrot.lane.b32.xlu0 %v312_v21, %s1732_s29  ;;  %v291_v31 = vrot.slane %v286_v25, %v290_v3  ;;  %v295_v32 = vrot.slane %v286_v25, %v294_v4  ;;  %v861_v33 = vcombine.low %v856_v23, %v860_v24  ;;  %s1741_s11 = smov 112   ;;  %s1742_s12 = smov 108   ;;  %vm280_vm2 = vcmask 1043592  }
  0x53   : > { %v1092_v34 = vrot.slane %v1087_v29, %v290_v3  ;;  %v1096_v35 = vrot.slane %v1087_v29, %v294_v4  ;;  %v979_v36 = vcombine.low %v974_v27, %v978_v28  ;;  %v1210_v37 = vrot.slane %v1205_v30, %v290_v3  ;;  %s1744_s26 = smov 111   ;;  %s1745_s29 = smov 126  }
  0x54   : > { %v1214_v38 = vrot.slane %v1205_v30, %v294_v4  ;;  %v296_v39 = vcombine.low %v291_v31, %v295_v32  ;;  %vm281_vm3 = vcmask 1047556   ;;  %vm276_vm4 = vcmask 138240   ;;  %s1751_s23 = smov 94   ;;  %p2071_p3 = scmp.ne.s32.totalorder %s2065_s14, 0 }
  0x55   : > { %v1097_v40 = vcombine.low %v1092_v34, %v1096_v35  ;;  %vm282_vm5 = vmor %vm281_vm3, %vm280_vm2  ;;  %vm340_vm6 = vcmask 1043456   ;;  %vm630_vm7 = vcmask 130048   ;;  %vm337_vm8 = vcmask 31744  }
  0x56   : > { %627 = vrot.lane.b32.xlu1 %v626_v22, %s1733_s6  ;;  %745 = vrot.lane.b32.xlu0 %v744_v26, %s1730_s24  ;;  %v1215_v41 = vcombine.low %v1210_v37, %v1214_v38  ;;  %s1743_s24 = smov 127   ;;  %s1746_s6 = smov 110   ;;  %vm316_vm9 = vcmask 7168   ;;  %vm865_vm10 = vcmask 146432   ;;  %vm512_vm11 = vcmask 15360  }
  0x57   : > { %vm983_vm12 = vcmask 261120   ;;  %vm1101_vm13 = vcmask 269312   ;;  %vm1219_vm14 = vcmask 277504   ;;  %vm649_vm15 = vcmask 916480  }
  0x58   : > { %vm334_vm1 = vcmask 1039360   ;;  %vm531_vm2 = vcmask 1031168   ;;  %vm766_vm3 = vcmask 908288  }
  0x5a   : > { %862 = vrot.lane.b32.xlu1 %v861_v33, %s1734_s7  ;;  %980 = vrot.lane.b32.xlu0 %v979_v36, %s1735_s8  ;;  %s1747_s7 = smov 104   ;;  %s1748_s8 = smov 96  }
  0x5e   : > { %1098 = vrot.lane.b32.xlu1 %v1097_v40, %s1736_s16  ;;  %1216 = vrot.lane.b32.xlu0 %v1215_v41, %s1737_s17  ;;  %s1749_s16 = smov 100   ;;  %s1750_s17 = smov 95   ;;  %v1752_v40 = vmov 0  }
  0x5f   : > { %1599 = vset.pattern.permute.xlu1 %v1752_v40  ;;  %1600 = vset.pattern.permute.xlu0 %v1752_v40 }
  0x62   : > { %323 = vrot.lane.b32.xlu0 %v1913_v42, %s1738_s27 }
  0x66   : > { %520 = vrot.lane.b32.xlu0 %v1913_v42, %s1739_s28  ;;  %s1480_s28 = sshll.u32 %s1891_s9, 4 }
  0x6a   : > { %638 = vrot.lane.b32.xlu0 %v1913_v42, %s1740_s10  ;;  %s256_s10 = scalar_lea.vmem [#allocation8], %s1480_s28 }
  0x6e   : > { %755 = vrot.lane.b32.xlu0 %v1913_v42, %s1741_s11 }
  0x72   : > { %873 = vrot.lane.b32.xlu0 %v1913_v42, %s1742_s12 }
  0xbc   : > { %v274_v43 = vpop.permute.xlu0 %273 }
  0xbd   : > { %v275_v44 = vrot.slane %v274_v43, 4 }
  0xbf   : > { %v277_v45 = vsel %vm276_vm4, %v275_v44, %v274_v43  ;;  %284 = vst.msk [vmem:[#allocation2 + $0x8] sm:$0xf] %vm267_vm0, %v275_v44  ;;  %v1320_v44 = vld [vmem:[%s2052_s2] sm:$0xff]  ;;  %vm884_vm0 = vcmask 900096  }
  0xc0   : > { %283 = vst.msk [vmem:[#allocation2] sm:$0xff] %vm282_vm5, %v277_v45  ;;  %vm1120_vm5 = vcmask 777216  }
  0xc4   : > { %v510_v46 = vpop.permute.xlu1 %509  ;;  %v314_v47 = vpop.permute.xlu0 %313 }
  0xc5   : > { %v315_v49 = vrot.slane %v314_v47, 4  ;;  %v511_v62 = vrot.slane %v510_v46, 4 }
  0xc6   : > { %v300_v52 = vld [vmem:[#allocation2 + $0x8] sm:$0xf] }
  0xc7   : > { %v614_v53 = vld [vmem:[#allocation2 + $0x8] sm:$0xf]  ;;  %v1923_v54 = vld [vmem:[#allocation2] sm:$0xff]  ;;  %v321_v55 = vmul.f32 %v315_v49, %v300_v52  ;;  %v317_v13 = vsel %vm316_vm9, %v315_v49, %v314_v47  ;;  %v513_v18 = vsel %vm512_vm11, %v511_v62, %v510_v46 }
  0xc8   : > { %v628_v48 = vpop.permute.xlu1 %627  ;;  %v746_v51 = vpop.permute.xlu0 %745  ;;  %v732_v57 = vld [vmem:[#allocation2 + $0x8] sm:$0xf]  ;;  %v298_v61 = vmul.f32 %v1923_v54, %v296_v39  ;;  %v320_v14 = vmul.f32 %v1923_v54, %v317_v13  ;;  %v516_v20 = vmul.f32 %v513_v18, %v1923_v54 }
  0xc9   : > { %v629_v50 = vrot.slane %v628_v48, 4  ;;  %v747_v58 = vrot.slane %v746_v51, 4  ;;  %v496_v60 = vld [vmem:[#allocation2 + $0x8] sm:$0xf]  ;;  %332 = vrot.lane.b32.xlu0 %v321_v55, %s1743_s24 }
  0xca   : > { %v417_v2 = vcombine.high %v298_v61, %v298_v61  ;;  %v517_v3 = vmul.f32 %v511_v62, %v496_v60  ;;  %v849_v5 = vld [vmem:[#allocation2 + $0x8] sm:$0xf]  ;;  %v327_v36 = vcombine.high %v320_v14, %v320_v14  ;;  %v524_v37 = vcombine.high %v516_v20, %v516_v20 }
  0xcb   : > { %v635_v56 = vmul.f32 %v629_v50, %v614_v53  ;;  %v752_v63 = vmul.f32 %v747_v58, %v732_v57  ;;  %v631_v8 = vsel %vm630_vm7, %v629_v50, %v628_v48  ;;  %v967_v9 = vld [vmem:[#allocation2 + $0x8] sm:$0xf]  ;;  %v748_v12 = vsel %vm276_vm4, %v747_v58, %v746_v51 }
  0xcc   : > { %v863_v59 = vpop.permute.xlu1 %862  ;;  %v981_v4 = vpop.permute.xlu0 %980  ;;  %1485 = vmatprep.subr.msk.mxu1 %vm340_vm6, %v417_v2  ;;  %v634_v11 = vmul.f32 %v631_v8, %v1923_v54  ;;  %v751_v15 = vmul.f32 %v748_v12, %v1923_v54  ;;  %v1085_v38 = vld [vmem:[#allocation2 + $0x8] sm:$0xf]  ;;  %vm1002_vm4 = vcmask 785408   ;;  %vm1238_vm7 = vcmask 769024  }
  0xcd   : > { %647 = vrot.lane.b32.xlu1 %v635_v56, %s1741_s11  ;;  %v864_v0 = vrot.slane %v863_v59, 4  ;;  %529 = vrot.lane.b32.xlu0 %v517_v3, %s1745_s29  ;;  %v982_v7 = vrot.slane %v981_v4, 4  ;;  %v1203_v41 = vld [vmem:[#allocation2 + $0x8] sm:$0xf] }
  0xce   : > { %1486 = vmatpush1.msk.msra.mxu1 %vm340_vm6, %v298_v61  ;;  %v642_v16 = vcombine.high %v634_v11, %v634_v11  ;;  %v759_v22 = vcombine.high %v751_v15, %v751_v15 }
  0xcf   : > { %v870_v6 = vmul.f32 %v864_v0, %v849_v5  ;;  %1487 = vmatmul.mubr.msk.f32.vlgmr.msra.gmra.mxu1 %vm337_vm8, %v1913_v42  ;;  %v988_v10 = vmul.f32 %v982_v7, %v967_v9  ;;  %v866_v17 = vsel %vm865_vm10, %v864_v0, %v863_v59  ;;  %v984_v23 = vsel %vm983_vm12, %v982_v7, %v981_v4 }
  0xd0   : > { %722 = vmatprep.mubr.f32.mxu1 %v1729_v1  ;;  %v1099_v19 = vpop.permute.xlu1 %1098  ;;  %v869_v21 = vmul.f32 %v866_v17, %v1923_v54  ;;  %v1217_v25 = vpop.permute.xlu0 %1216  ;;  %v987_v26 = vmul.f32 %v984_v23, %v1923_v54 }
  0xd1   : > { %764 = vrot.lane.b32.xlu1 %v752_v63, %s1744_s26  ;;  %991 = vrot.lane.b32.xlu0 %v1913_v42, %s1747_s7  ;;  %v1100_v24 = vrot.slane %v1099_v19, 4  ;;  %v1218_v29 = vrot.slane %v1217_v25, 4 }
  0xd2   : > { %v877_v27 = vcombine.high %v869_v21, %v869_v21  ;;  %v995_v31 = vcombine.high %v987_v26, %v987_v26 }
  0xd3   : > { %v1102_v28 = vsel %vm1101_vm13, %v1100_v24, %v1099_v19  ;;  %v1220_v32 = vsel %vm1219_vm14, %v1218_v29, %v1217_v25  ;;  %v1106_v39 = vmul.f32 %v1100_v24, %v1085_v38  ;;  %v1224_v43 = vmul.f32 %v1218_v29, %v1203_v41 }
  0xd4   : > { %v1105_v30 = vmul.f32 %v1102_v28, %v1923_v54  ;;  %v1223_v33 = vmul.f32 %v1220_v32, %v1923_v54 }
  0xd5   : > { %882 = vrot.lane.b32.xlu1 %v870_v6, %s1746_s6  ;;  %1109 = vrot.lane.b32.xlu0 %v1913_v42, %s1749_s16 }
  0xd6   : > { %v1113_v34 = vcombine.high %v1105_v30, %v1105_v30  ;;  %v1231_v35 = vcombine.high %v1223_v33, %v1223_v33 }
  0xd9   : > { %1000 = vrot.lane.b32.xlu1 %v988_v10, %s1748_s8  ;;  %645 = vrot.lane.b32.xlu0 %v642_v16, %s1741_s11 }
  0xdd   : > { %328 = vrot.lane.b32.xlu1 %v320_v14, %s1743_s24  ;;  %762 = vrot.lane.b32.xlu0 %v759_v22, %s1744_s26 }
  0xe1   : > { %525 = vrot.lane.b32.xlu1 %v516_v20, %s1745_s29  ;;  %880 = vrot.lane.b32.xlu0 %v877_v27, %s1746_s6 }
  0xe5   : > { %643 = vrot.lane.b32.xlu1 %v634_v11, %s1741_s11  ;;  %998 = vrot.lane.b32.xlu0 %v995_v31, %s1748_s8  ;;  %s1515_s11 = sshll.u32 %s1805_s22, 8 }
  0xe9   : > { %760 = vrot.lane.b32.xlu1 %v751_v15, %s1744_s26  ;;  %1116 = vrot.lane.b32.xlu0 %v1113_v34, %s1750_s17  ;;  %s1361_s26 = scalar_lea.hbm %s2054_s4, %s1515_s11 }
  0xed   : > { %878 = vrot.lane.b32.xlu1 %v869_v21, %s1746_s6  ;;  %1234 = vrot.lane.b32.xlu0 %v1231_v35, %s1751_s23  ;;  %s1345_s6 = scalar_lea.sflag [#allocation5], %s1891_s9 }
  0xf1   : > { %996 = vrot.lane.b32.xlu1 %v987_v26, %s1748_s8  ;;  %1227 = vrot.lane.b32.xlu0 %v1913_v42, %s1748_s8  ;;  %v324_v42 = vpop.permute.xlu0 %323  ;;  %s1753_s8 = smov [#allocation8]  }
  0xf2   : > { %s1659_s16 = sshll.u32 %s1753_s8, 4  ;;  %s1660_s16 = int_to_ptr.vmem [resolvable:$false] %s1659_s16 }
  0xf5   : > { %330 = vrot.lane.b32.xlu1 %v327_v36, %s1743_s24  ;;  %v521_v45 = vpop.permute.xlu0 %520 }
  0xf9   : > { %527 = vrot.lane.b32.xlu1 %v524_v37, %s1745_s29  ;;  %v639_v46 = vpop.permute.xlu0 %638  ;;  %s1363_s29 = sshll.u32 %s256_s10, 4  ;;  %s1364_s29 = int_to_ptr.vmem [resolvable:$true] %s1363_s29 }
  0xfa   : > { %s1655_s7 = scalar_lea.vmem %s1364_s29, 256  ;;  %p1662_p10 = scmp.lt.s32.totalorder %s1364_s29, %s1660_s16 }
  0xfb   : > { %p1656_p8 = scmp.ne.s32.totalorder %s1364_s29, %s1655_s7 }
  0xfd   : > { %1118 = vrot.lane.b32.xlu1 %v1106_v39, %s1750_s17  ;;  %v1967_v47 = vpop.permute.xlu0 %755  ;;  %p1657_p11 = pnand %p1656_p8, %p2071_p3 }
  0xff   : > { %p1658_p7 = pneg %p1657_p11 }
 0x101   : > { %1114 = vrot.lane.b32.xlu1 %v1105_v30, %s1750_s17  ;;  %v874_v48 = vpop.permute.xlu0 %873  ;;  %s1661_s17 = scalar_lea.vmem %s1660_s16, 512 }
 0x102   : > { %p1663_p2 = scmp.lt.s32.totalorder %s1661_s17, %s1655_s7 }
 0x104   : > { %p1664_p13 = por %p1663_p2, %p1662_p10 }
 0x105   : > { %1236 = vrot.lane.b32.xlu1 %v1224_v43, %s1751_s23 }
 0x106   : > { %p1665_p0 = pnand %p1664_p13, %p1658_p7 }
 0x109   : > { %1232 = vrot.lane.b32.xlu1 %v1223_v33, %s1751_s23 }
 0x10d   : > { %1323 = vperm.xlu1 %1599, %v1320_v44  }
 0x13b   : > { %v333_v50 = vpop.permute.xlu0 %332 }
 0x13f   : > { %v648_v49 = vpop.permute.xlu1 %647  ;;  %v530_v52 = vpop.permute.xlu0 %529 }
 0x143   : > { %v765_v51 = vpop.permute.xlu1 %764  ;;  %v1969_v54 = vpop.permute.xlu0 %991 }
 0x147   : > { %v883_v53 = vpop.permute.xlu1 %882  ;;  %v1110_v56 = vpop.permute.xlu0 %1109 }
 0x14b   : > { %v1001_v55 = vpop.permute.xlu1 %1000  ;;  %v646_v58 = vpop.permute.xlu0 %645 }
 0x14c   : > { %v651_v59 = vsel %vm649_vm15, %v646_v58, %v648_v49 }
 0x14d   : > { %1491 = vmatprep.subr.msk.mxu1 %vm340_vm6, %v651_v59 }
 0x14f   : > { %v329_v57 = vpop.permute.xlu1 %328  ;;  %v763_v61 = vpop.permute.xlu0 %762 }
 0x150   : > { %v768_v14 = vsel %vm766_vm3, %v763_v61, %v765_v51 }
 0x153   : > { %v526_v60 = vpop.permute.xlu1 %525  ;;  %v881_v63 = vpop.permute.xlu0 %880 }
 0x154   : > { %v886_v2 = vsel %vm884_vm0, %v881_v63, %v883_v53 }
 0x157   : > { %v644_v62 = vpop.permute.xlu1 %643  ;;  %v999_v10 = vpop.permute.xlu0 %998 }
 0x158   : > { %v650_v0 = vsel %vm649_vm15, %v644_v62, %v646_v58  ;;  %v1004_v18 = vsel %vm1002_vm4, %v999_v10, %v1001_v55 }
 0x159   : > { %1492 = vmatpush1.msk.msra.mxu1 %vm340_vm6, %v650_v0 }
 0x15a   : > { %1493 = vmatmul.mubr.msk.f32.vlgmr.msra.gmra.mxu1 %vm337_vm8, %v639_v46  ;;  %1497 = vmatprep.subr.msk.mxu1 %vm340_vm6, %v886_v2 }
 0x15b   : > { %v761_v3 = vpop.permute.xlu1 %760  ;;  %957 = vmatprep.mubr.f32.mxu1 %v1729_v1  ;;  %v1117_v16 = vpop.permute.xlu0 %1116 }
 0x15c   : > { %v767_v15 = vsel %vm766_vm3, %v761_v3, %v763_v61 }
 0x15f   : > { %v879_v4 = vpop.permute.xlu1 %878  ;;  %v1235_v23 = vpop.permute.xlu0 %1234 }
 0x160   : > { %v885_v5 = vsel %vm884_vm0, %v879_v4, %v881_v63 }
 0x161   : > { %1498 = vmatpush1.msk.msra.mxu1 %vm340_vm6, %v885_v5 }
 0x162   : > { %1499 = vmatmul.mubr.msk.f32.vlgmr.msra.gmra.mxu1 %vm337_vm8, %v874_v48 }
 0x163   : > { %v997_v6 = vpop.permute.xlu1 %996  ;;  %1193 = vmatprep.mubr.f32.mxu1 %v1729_v1  ;;  %v1228_v27 = vpop.permute.xlu0 %1227 }
 0x164   : > { %v1003_v20 = vsel %vm1002_vm4, %v997_v6, %v999_v10 }
 0x167   : > { %v331_v7 = vpop.permute.xlu1 %330 }
 0x168   : > { %v336_v8 = vsel %vm334_vm1, %v331_v7, %v333_v50  ;;  %v335_v9 = vsel %vm334_vm1, %v329_v57, %v331_v7 }
 0x169   : > { %1482 = vmatprep.subr.msk.mxu0 %vm340_vm6, %v336_v8 }
 0x16a   : > { %1483 = vmatpush1.msk.msra.mxu0 %vm340_vm6, %v335_v9 }
 0x16b   : > { %1484 = vmatmul.mubr.msk.f32.vlgmr.msra.gmra.mxu0 %vm337_vm8, %v324_v42  ;;  %v528_v11 = vpop.permute.xlu1 %527 }
 0x16c   : > { %v532_v12 = vsel %vm531_vm2, %v526_v60, %v528_v11  ;;  %v533_v13 = vsel %vm531_vm2, %v528_v11, %v530_v52  ;;  %604 = vmatprep.mubr.f32.mxu0 %v1729_v1 }
 0x16d   : > { %1488 = vmatprep.subr.msk.mxu0 %vm340_vm6, %v533_v13 }
 0x16e   : > { %1489 = vmatpush1.msk.msra.mxu0 %vm340_vm6, %v532_v12 }
 0x16f   : > { %1490 = vmatmul.mubr.msk.f32.vlgmr.msra.gmra.mxu0 %vm337_vm8, %v521_v45  ;;  %1494 = vmatprep.subr.msk.mxu0 %vm340_vm6, %v768_v14  ;;  %v1119_v17 = vpop.permute.xlu1 %1118 }
 0x170   : > { %v1122_v19 = vsel %vm1120_vm5, %v1117_v16, %v1119_v17  ;;  %1495 = vmatpush1.msk.msra.mxu0 %vm340_vm6, %v767_v15  ;;  %839 = vmatprep.mubr.f32.mxu0 %v1729_v1 }
 0x171   : > { %1500 = vmatprep.subr.msk.mxu0 %vm340_vm6, %v1004_v18  ;;  %1503 = vmatprep.subr.msk.mxu1 %vm340_vm6, %v1122_v19 }
 0x173   : > { %1496 = vmatmul.mubr.msk.f32.vlgmr.msra.gmra.mxu0 %vm337_vm8, %v1967_v47  ;;  %v1115_v21 = vpop.permute.xlu1 %1114 }
 0x174   : > { %1501 = vmatpush1.msk.msra.mxu0 %vm340_vm6, %v1003_v20  ;;  %v1121_v22 = vsel %vm1120_vm5, %v1115_v21, %v1117_v16  ;;  %1075 = vmatprep.mubr.f32.mxu0 %v1729_v1 }
 0x175   : > { %1504 = vmatpush1.msk.msra.mxu1 %vm340_vm6, %v1121_v22 }
 0x176   : > { %1505 = vmatmul.mubr.msk.f32.vlgmr.msra.gmra.mxu1 %vm337_vm8, %v1110_v56 }
 0x177   : > { %1502 = vmatmul.mubr.msk.f32.vlgmr.msra.gmra.mxu0 %vm337_vm8, %v1969_v54  ;;  %v1237_v24 = vpop.permute.xlu1 %1236 }
 0x178   : > { %v1240_v25 = vsel %vm1238_vm7, %v1235_v23, %v1237_v24  ;;  %1311 = vmatprep.mubr.f32.mxu0 %v1729_v1 }
 0x179   : > { %1506 = vmatprep.subr.msk.mxu0 %vm340_vm6, %v1240_v25 }
 0x17b   : > { %v1233_v26 = vpop.permute.xlu1 %1232 }
 0x17c   : > { %v1239_v28 = vsel %vm1238_vm7, %v1233_v26, %v1235_v23 }
 0x17d   : > { %1507 = vmatpush1.msk.msra.mxu0 %vm340_vm6, %v1239_v28 }
 0x17e   : > { %1508 = vmatmul.mubr.msk.f32.vlgmr.msra.gmra.mxu0 %vm337_vm8, %v1228_v27 }
 0x188   : > { %v1324_v56 = vpop.permute.xlu1 %1323 }
 0x18f   : > { %v490_v29 = vpop.f32.mrf.mxu1 }
 0x191   : > { %v492_v30 = vpop.f32.mrf.mxu1 }
 0x21a   : > { %v724_v32 = vpop.f32.mrf.mxu1 }
 0x21c   : > { %v726_v38 = vpop.f32.mrf.mxu1 }
 0x222   : > { %v959_v41 = vpop.f32.mrf.mxu1 }
 0x224   : > { %v961_v48 = vpop.f32.mrf.mxu1 }
 0x22b   : > { %v411_v31 = vpop.f32.mrf.mxu0 }
 0x22c   : > { %v491_v34 = vadd.f32 %v490_v29, %v411_v31 }
 0x22d   : > { %v413_v33 = vpop.f32.mrf.mxu0 }
 0x22e   : > { %v493_v36 = vadd.f32 %v492_v30, %v413_v33 }
 0x22f   : > { %v606_v35 = vpop.f32.mrf.mxu0 }
 0x230   : > { %v611_v37 = vadd.f32 %v606_v35, %v491_v34 }
 0x231   : > { %v608_v1 = vpop.f32.mrf.mxu0 }
 0x232   : > { %v612_v39 = vadd.f32 %v608_v1, %v493_v36  ;;  %v729_v40 = vadd.f32 %v724_v32, %v611_v37 }
 0x233   : > { %v841_v43 = vpop.f32.mrf.mxu0 }
 0x234   : > { %v846_v44 = vadd.f32 %v841_v43, %v729_v40  ;;  %v730_v42 = vadd.f32 %v726_v38, %v612_v39 }
 0x235   : > { %v843_v45 = vpop.f32.mrf.mxu0 }
 0x236   : > { %v847_v46 = vadd.f32 %v843_v45, %v730_v42  ;;  %v964_v47 = vadd.f32 %v959_v41, %v846_v44  ;;  %v1195_v53 = vpop.f32.mrf.mxu1 }
 0x237   : > { %v1077_v49 = vpop.f32.mrf.mxu0 }
 0x238   : > { %v965_v50 = vadd.f32 %v961_v48, %v847_v46  ;;  %v1082_v51 = vadd.f32 %v1077_v49, %v964_v47  ;;  %v1197_v57 = vpop.f32.mrf.mxu1 }
 0x239   : > { %v1079_v52 = vpop.f32.mrf.mxu0 }
 0x23a   : > { %v1083_v54 = vadd.f32 %v1079_v52, %v965_v50  ;;  %v1200_v55 = vadd.f32 %v1195_v53, %v1082_v51 }
 0x23c   : > { %v1201_v60 = vadd.f32 %v1197_v57, %v1083_v54 }
 0x23e   : > { %v1313_v58 = vpop.f32.mrf.mxu0 }
 0x23f   : > { %v1318_v59 = vadd.f32 %v1313_v58, %v1200_v55 }
 0x240   : > { %v1315_v61 = vpop.f32.mrf.mxu0 }
 0x241   : > { %v1319_v62 = vadd.f32 %v1315_v61, %v1201_v60  ;;  %v1326_v63 = vadd.f32 %v1324_v56, %v1318_v59 }
 0x243   : > { %v1327_v0 = vadd.f32 %v1324_v56, %v1319_v62  ;;  %v1328_v2 = vmax.f32 %v1326_v63, 0.0 }
 0x245   : > { %v1329_v3 = vmax.f32 %v1327_v0, 0.0  ;;  %1330 = vst [vmem:[%s256_s10] sm:$0xff] %v1328_v2  ;;  %v1336_v5 = vmul.f32 %v1328_v2, %v1328_v2 }
 0x247   : > { %1331 = vst [vmem:[%s256_s10 + $0x8] sm:$0xff] %v1329_v3  ;;  %v1332_v4 = vadd.f32 %v1329_v3, %v1328_v2  ;;  %v1337_v6 = vmul.f32 %v1329_v3, %v1329_v3 }
 0x249   : > { %1333 = vadd.xlane.f32.xlu0 %v1332_v4  ;;  %v1338_v7 = vadd.f32 %v1337_v6, %v1336_v5 }
 0x24b   : > { %1339 = vadd.xlane.f32.xlu1 %v1338_v7 }
 0x24c   : > { %1668 = shalt.err (!%p1665_p0)
}
 0x24d   : > { %s1669_s23 = scalar_lea.hbm %s1361_s26, 256  ;;  %s1673_s27 = scalar_lea.hbm %s2054_s4, 512 }
 0x24e   : > { %p1670_p5 = scmp.ne.s32.totalorder %s1361_s26, %s1669_s23  ;;  %p1674_p1 = scmp.lt.s32.totalorder %s1361_s26, %s2054_s4 }
 0x24f   : > { %p1675_p4 = scmp.lt.s32.totalorder %s1673_s27, %s1669_s23 }
 0x250   : > { %p1671_p9 = pnand %p1670_p5, %p2071_p3 }
 0x251   : > { %p1676_p6 = por %p1675_p4, %p1674_p1 }
 0x252   : > { %p1672_p12 = pneg %p1671_p9 }
 0x254   : > { %p1677_p8 = pnand %p1676_p6, %p1672_p12 }
 0x256   : > { %1680 = shalt.err (!%p1677_p8)
}
 0x257   : > { %1522 = dma.vmem_to_hbm [thread:$0]  (%p2071_p3), %s1364_s29, 256, %s1361_s26, %s1345_s6  }
 0x258   : > { %p263_p11 = scmp.lt.s32.totalorder %s1805_s22, 1 }
 0x25a   : > { %s2079_s22 = smov (!%p263_p11, %s1805_s22), 1 }
 0x25b   : > { %s1481_s11 = sshll.u32 %s2079_s22, 3 }
 0x25c   : > { %s266_s7 = scalar_lea.vmem %s2055_s5, %s1481_s11 }
 0x2d2   : > { %v1334_v8 = vpop.xlane.xlu0 %1333 }
 0x2d4   : > { %v1340_v9 = vpop.xlane.xlu1 %1339 }
 0x2d5   : > { %v1342_v10 = vsel %vm316_vm9, %v1334_v8, %v1340_v9 }
 0x2d6   : > { %1343 = vst.msk [vmem:[%s266_s7] sm:$0xff] %vm512_vm11, %v1342_v10 }
 0x2d7 PF: > { %s1378_s14 = sand.u32 1, %s1711_s18   ;;  %p2072_p7 = scmp.ne.s32.totalorder %s2061_s25, 0 }
 0x2d8   : > { %p2073_p3 = scmp.ge.s32.totalorder %s1723_s21, 2  ;;  %s1379_s22 = scalar_lea.sflag [#allocation5], %s1378_s14 }
 0x2da   : > { %p1533_p10 = pnand %p2073_p3, %p2072_p7 }
 0x2dc   : > { %p1534_p2 = pneg %p1533_p10 }
 0x2de   : > { %1706 = dma.done.wait (%p1534_p2), %s1379_s22, 256  }
 0x2df   : > { %1708 = vsyncadd (%p1534_p2), %s1379_s22, 4294967040  ;;  %p20_p13 = scmp.ge.s32.totalorder %s1838_s30, 4   ;;  %s2074_s18 = smov %s1715_s19 }
 0x2e0   : > { %s2075_s19 = smov %s1719_s20  ;;  %s2076_s20 = smov %s1855_s13 }
 0x2e1   : > { %s2077_s21 = smov %s1838_s30  ;;  %22 = sbr.rel (!%p20_p13) target bundleno = 6 (0x6), region = 105 }
 0x2e6   :  { %1391 = vsyncpa [#allocation4], 1 }
 0x2e7   :  { %1393 = vsyncpa [#allocation4 + $0x1], 1 }
 0x2e8   :  { %1394 = vsyncpa [#allocation7], 1 }
 0x2e9   :  { %1395 = vsyncpa [#allocation5], 1 }
 0x2ea   :  { %1397 = vsyncpa [#allocation5 + $0x1], 1 }

</bundles_post_ra>
